<compile_context>
chip_gen: v7x
topology: tpu7x:2x2x1
jax: 0.10.0
libtpu: 0.0.40
codegen_flags: <defaults>
</compile_context>

<pallas_src>
import functools

import jax
import jax.numpy as jnp
from jax.experimental import pallas as pl
from jax.experimental.pallas import tpu as pltpu


def _cdiv(a, b):
    return (a + b - 1) // b


def _round_up(x, m):
    return _cdiv(x, m) * m


def _dice_ce_partials_kernel(x_ref, t_ref, out_ref,
                             ce_acc, rt_acc, rs_acc, ts_acc, rmax_acc,
                             *, rows_valid, tiles_per_split, t8, needs_mask):
    """Grid = (N, n_splits, tiles_per_split).  Block = (C, T8, 128): positions dense on
    (sublane, lane), channels on the leading axis."""
    s = pl.program_id(1)
    j = pl.program_id(2)

    @pl.when(j == 0)
    def _init():
        ce_acc[...] = jnp.zeros_like(ce_acc)
        rt_acc[...] = jnp.zeros_like(rt_acc)
        rs_acc[...] = jnp.zeros_like(rs_acc)
        ts_acc[...] = jnp.zeros_like(ts_acc)
        rmax_acc[...] = jnp.zeros_like(rmax_acc)   # relu(x) >= 0, so 0 is a valid identity

    x = x_ref[...].astype(jnp.float32)   # (C, T8, 128); cast happens in-kernel
    t = t_ref[...].astype(jnp.float32)

    # ---- per-position channel reductions over the small leading C axis (pure VPU) ----
    # CE with soft targets: -sum_c t_c*log_softmax(x)_c = lse(x)*sum_c t_c - sum_c t_c*x_c
    m = jnp.max(x, axis=0)                                        # (T8, 128)
    lse = m + jnp.log(jnp.sum(jnp.exp(x - m), axis=0))            # (T8, 128)
    st = jnp.sum(t, axis=0)                                       # sum_c t (CE term + label sum)
    stx = jnp.sum(t * x, axis=0)
    ce_pos = lse * st - stx                                       # per-position CE

    # SoftDice (p=1) pieces: only sums of relu(x), relu(x)*t, t and max(relu(x)).
    r = jnp.maximum(x, 0.0)
    rt_pos = jnp.sum(r * t, axis=0)
    rs_pos = jnp.sum(r, axis=0)
    rm_pos = jnp.max(r, axis=0)

    g = t8 // 8

    def _accumulate(ce_p, rt_p, rs_p, ts_p, rm_p):
        # (T8,128) -> (8,128) via a free vreg regrouping + slab adds; keeps the per-step
        # accumulator read-modify-write at ONE vreg load + one store per quantity.
        ce_acc[...] += jnp.sum(ce_p.reshape(g, 8, 128), axis=0)
        rt_acc[...] += jnp.sum(rt_p.reshape(g, 8, 128), axis=0)
        rs_acc[...] += jnp.sum(rs_p.reshape(g, 8, 128), axis=0)
        ts_acc[...] += jnp.sum(ts_p.reshape(g, 8, 128), axis=0)
        rmax_acc[...] = jnp.maximum(rmax_acc[...],
                                    jnp.max(rm_p.reshape(g, 8, 128), axis=0))

    if needs_mask:
        # Only tiles that overhang the valid row range pay the mask; the mask is applied
        # to the already-reduced (T8,128) partials with where-selects so garbage/NaN in
        # the out-of-bounds tail cannot leak into the sums.
        row0 = (s * tiles_per_split + j) * t8
        remaining = rows_valid - row0

        @pl.when(remaining >= t8)
        def _full():
            _accumulate(ce_pos, rt_pos, rs_pos, st, rm_pos)

        @pl.when(remaining < t8)
        def _partial():
            row = jax.lax.broadcasted_iota(jnp.int32, (t8, 128), 0)
            valid = row < remaining
            z = jnp.zeros((t8, 128), jnp.float32)
            _accumulate(jnp.where(valid, ce_pos, z),
                        jnp.where(valid, rt_pos, z),
                        jnp.where(valid, rs_pos, z),
                        jnp.where(valid, st, z),
                        jnp.where(valid, rm_pos, z))
    else:
        _accumulate(ce_pos, rt_pos, rs_pos, st, rm_pos)

    @pl.when(j == pl.num_programs(2) - 1)
    def _finalize():
        # One tiny cross-lane reduction per quantity per (image, split), then write the 5
        # partials into a lane-dense (8, 128) output slice.
        ce_s = jnp.sum(ce_acc[...])
        rt_s = jnp.sum(rt_acc[...])
        rs_s = jnp.sum(rs_acc[...])
        ts_s = jnp.sum(ts_acc[...])
        rm_s = jnp.max(rmax_acc[...])
        lane = jax.lax.broadcasted_iota(jnp.int32, out_ref.shape, 1)
        out_ref[...] = (jnp.where(lane == 0, ce_s, 0.0)
                        + jnp.where(lane == 1, rt_s, 0.0)
                        + jnp.where(lane == 2, rs_s, 0.0)
                        + jnp.where(lane == 3, ts_s, 0.0)
                        + jnp.where(lane == 4, rm_s, 0.0))


def _vmem_budget_bytes():
    """(streamed-data budget, vmem_limit_bytes) keyed off the actual chip."""
    try:
        cap = int(pltpu.get_tpu_info().vmem_capacity_bytes)
    except Exception:
        cap = 64 * 1024 * 1024
    if cap >= 128 * 1024 * 1024:                        # v5e / v6e (128 MiB parts)
        return 32 * 1024 * 1024, 64 * 1024 * 1024
    return 16 * 1024 * 1024, 32 * 1024 * 1024           # v7x (64 MiB part)


def _pick_tiling(r_rows, c, itemsize, n_splits, data_budget):
    """Balanced multiple-of-8 row tiles sized to the VMEM budget (dense (C,T8,128) slabs)."""
    # Bytes per 8 rows x 128 lanes:
    #   streamed blocks : 2 arrays x 2 pipeline buffers x C slabs x itemsize
    #   f32 working set : ~(2C + 8) slabs (x/t casts, relu, exp, per-position partials)
    per8 = 8 * 128 * (2 * 2 * c * itemsize + (2 * c + 8) * 4)
    max_t8 = max(8, (data_budget // per8) * 8)
    rows_needed = _cdiv(r_rows, n_splits)
    tiles_per_split = _cdiv(rows_needed, max_t8)
    t8 = _round_up(_cdiv(rows_needed, tiles_per_split), 8)   # balanced -> mask usually off
    needs_mask = (n_splits * tiles_per_split * t8) != r_rows
    return t8, tiles_per_split, needs_mask


def dice_cross_entropy_loss(preds, labels, *, weight_ce=1.0, weight_dice=1.0, smooth=1.0):
    """preds, labels: (N, C, *spatial) arrays in the native PyTorch NCHW convention."""
    assert preds.shape == labels.shape
    n, c = preds.shape[0], preds.shape[1]
    hw = 1
    for d in preds.shape[2:]:
        hw *= d

    x = preds.reshape(n, c, hw)
    t = labels.reshape(n, c, hw)

    # Positions fill both sublanes and lanes: (N, C, R, 128).  Metadata-only reshape when
    # HW % 128 == 0; otherwise zero-pad the ragged 128-column (zeros contribute exactly 0).
    hw_pad = _round_up(hw, 128)
    if hw_pad != hw:
        x = jnp.pad(x, ((0, 0), (0, 0), (0, hw_pad - hw)))
        t = jnp.pad(t, ((0, 0), (0, 0), (0, hw_pad - hw)))
    r_rows = hw_pad // 128
    x = x.reshape(n, c, r_rows, 128)
    t = t.reshape(n, c, r_rows, 128)

    # Second parallel axis over the spatial rows so a single-image call still fills both
    # v7x TensorCores (harmless elsewhere: just one extra tiny partial to combine).
    n_splits = 2 if (n == 1 and r_rows >= 16) else 1

    itemsize = max(jnp.dtype(x.dtype).itemsize, jnp.dtype(t.dtype).itemsize)
    data_budget, vmem_limit = _vmem_budget_bytes()
    t8, tiles_per_split, needs_mask = _pick_tiling(r_rows, c, itemsize, n_splits, data_budget)

    kernel = functools.partial(
        _dice_ce_partials_kernel,
        rows_valid=r_rows, tiles_per_split=tiles_per_split, t8=t8, needs_mask=needs_mask)

    partials = pl.pallas_call(
        kernel,
        out_shape=jax.ShapeDtypeStruct((n, n_splits, 8, 128), jnp.float32),
        grid_spec=pltpu.PrefetchScalarGridSpec(
            num_scalar_prefetch=0,
            grid=(n, n_splits, tiles_per_split),
            in_specs=[
                pl.BlockSpec((None, c, t8, 128),
                             lambda i, s, j: (i, 0, s * tiles_per_split + j, 0)),
                pl.BlockSpec((None, c, t8, 128),
                             lambda i, s, j: (i, 0, s * tiles_per_split + j, 0)),
            ],
            out_specs=pl.BlockSpec((None, None, 8, 128), lambda i, s, j: (i, s, 0, 0)),
            scratch_shapes=[pltpu.VMEM((8, 128), jnp.float32)] * 5,
        ),
        compiler_params=pltpu.CompilerParams(
            # (batch, spatial-split) parallel for megacore; spatial-tile reduction arbitrary.
            dimension_semantics=("parallel", "parallel", "arbitrary"),
            vmem_limit_bytes=vmem_limit,
        ),
    )(x, t)

    # Tiny scalar epilogue: combine per-(image, split) partials and finalize CE + dice.
    row = partials[:, :, 0, :]          # (n, n_splits, 128)
    ce_sum = jnp.sum(row[..., 0])
    rt = jnp.sum(row[..., 1])           # sum(relu(x) * t)
    rs = jnp.sum(row[..., 2])           # sum(relu(x))
    ts = jnp.sum(row[..., 3])           # sum(t)
    rm = jnp.max(row[..., 4])           # max(relu(x))

    ce = ce_sum / (n * hw)              # mean over all (n, h, w) positions
    # If max(relu(x)) == 0 then relu(x) is identically 0, so the scale is irrelevant;
    # using 1.0 matches PyTorch's un-normalized branch exactly.
    inv = jnp.where(rm > 0.0, 1.0 / jnp.where(rm > 0.0, rm, 1.0), 1.0)
    numer = rt * inv
    denor = rs * inv + ts               # sum(preds**1 + labels**1)
    dice = -(2.0 * numer + smooth) / (denor + smooth)
    return weight_ce * ce + weight_dice * dice


def _reference_loss(preds, labels, weight_ce=1.0, weight_dice=1.0, smooth=1.0):
    """Plain-JAX reference matching the PyTorch module."""
    x = preds.astype(jnp.float32)
    t = labels.astype(jnp.float32)
    logp = jax.nn.log_softmax(x, axis=1)
    ce = -(t * logp).sum(axis=1).mean()
    r = jax.nn.relu(x)
    mx = r.max()
    p = jnp.where(mx > 0, r / jnp.where(mx > 0, mx, 1.0), r)
    numer = (p * t).sum()
    denor = (p + t).sum()
    dice = -(2.0 * numer + smooth) / (denor + smooth)
    return weight_ce * ce + weight_dice * dice


if __name__ == "__main__":
    key = jax.random.PRNGKey(0)
    k1, k2, k3, k4 = jax.random.split(key, 4)

    # Case 1: canonical small shape (N, C, H, W) = (2, 4, 16, 16); HW % 128 == 0.
    preds = jax.random.normal(k1, (2, 4, 16, 16), dtype=jnp.float32)
    labels = jax.random.uniform(k2, (2, 4, 16, 16), dtype=jnp.float32)
    loss = jax.block_until_ready(jax.jit(dice_cross_entropy_loss)(preds, labels))
    ref = jax.block_until_ready(_reference_loss(preds, labels))
    assert jnp.isfinite(loss), "kernel produced non-finite loss"
    assert jnp.allclose(loss, ref, rtol=1e-4, atol=1e-5), (loss, ref)

    # Case 2: ragged spatial extent (HW % 128 != 0) exercises the pad + tail-mask paths.
    preds2 = jax.random.normal(k3, (1, 3, 40, 40), dtype=jnp.float32)
    labels2 = jax.random.uniform(k4, (1, 3, 40, 40), dtype=jnp.float32)
    loss2 = jax.block_until_ready(jax.jit(dice_cross_entropy_loss)(preds2, labels2))
    ref2 = jax.block_until_ready(_reference_loss(preds2, labels2))
    assert jnp.isfinite(loss2), "kernel produced non-finite loss (ragged case)"
    assert jnp.allclose(loss2, ref2, rtol=1e-4, atol=1e-5), (loss2, ref2)

    print("KERNEL_OK")
</pallas_src>

<mosaic_0001>
module attributes {stable_mosaic.version = 11 : i64} {
  func.func @_dice_ce_partials_kernel(%arg0: i32, %arg1: i32, %arg2: i32, %arg3: memref<1x4x8x128xf32, #tpu.memory_space<vmem>>, %arg4: memref<1x4x8x128xf32, #tpu.memory_space<vmem>>, %arg5: memref<1x1x8x128xf32, #tpu.memory_space<vmem>>, %arg6: memref<8x128xf32, #tpu.memory_space<vmem>>, %arg7: memref<8x128xf32, #tpu.memory_space<vmem>>, %arg8: memref<8x128xf32, #tpu.memory_space<vmem>>, %arg9: memref<8x128xf32, #tpu.memory_space<vmem>>, %arg10: memref<8x128xf32, #tpu.memory_space<vmem>>) attributes {dimension_semantics = [#tpu.dimension_semantics<parallel>, #tpu.dimension_semantics<parallel>, #tpu.dimension_semantics<arbitrary>], iteration_bounds = array<i64: 2, 1, 1>, scalar_prefetch = 0 : i64, scratch_operands = 5 : i64, tpu.core_type = #tpu.core_type<tc>, window_params = [{transform_indices = @transform_0, window_bounds = array<i64: 1, 4, 8, 128>}, {transform_indices = @transform_1, window_bounds = array<i64: 1, 4, 8, 128>}, {transform_indices = @transform_2, window_bounds = array<i64: 1, 1, 8, 128>}]} {
    %c0_i32 = arith.constant 0 : i32
    %0 = arith.cmpi eq, %arg2, %c0_i32 : i32
    %1 = arith.extui %0 : i1 to i32
    %c0_i32_0 = arith.constant 0 : i32
    %2 = arith.cmpi ne, %1, %c0_i32_0 : i32
    scf.if %2 {
      %cst_21 = arith.constant 0.000000e+00 : f32
      %39 = vector.broadcast %cst_21 : f32 to vector<8x128xf32>
      %c0_22 = arith.constant 0 : index
      %c0_23 = arith.constant 0 : index
      %40 = vector.load %arg6[%c0_22, %c0_23] : memref<8x128xf32, #tpu.memory_space<vmem>>, vector<8x128xf32>
      tpu.vector_store %arg6[%c0_22, %c0_23], %39 {strides = array<i32>} : memref<8x128xf32, #tpu.memory_space<vmem>>, vector<8x128xf32>,
      %cst_24 = arith.constant 0.000000e+00 : f32
      %41 = vector.broadcast %cst_24 : f32 to vector<8x128xf32>
      %c0_25 = arith.constant 0 : index
      %c0_26 = arith.constant 0 : index
      %42 = vector.load %arg7[%c0_25, %c0_26] : memref<8x128xf32, #tpu.memory_space<vmem>>, vector<8x128xf32>
      tpu.vector_store %arg7[%c0_25, %c0_26], %41 {strides = array<i32>} : memref<8x128xf32, #tpu.memory_space<vmem>>, vector<8x128xf32>,
      %cst_27 = arith.constant 0.000000e+00 : f32
      %43 = vector.broadcast %cst_27 : f32 to vector<8x128xf32>
      %c0_28 = arith.constant 0 : index
      %c0_29 = arith.constant 0 : index
      %44 = vector.load %arg8[%c0_28, %c0_29] : memref<8x128xf32, #tpu.memory_space<vmem>>, vector<8x128xf32>
      tpu.vector_store %arg8[%c0_28, %c0_29], %43 {strides = array<i32>} : memref<8x128xf32, #tpu.memory_space<vmem>>, vector<8x128xf32>,
      %cst_30 = arith.constant 0.000000e+00 : f32
      %45 = vector.broadcast %cst_30 : f32 to vector<8x128xf32>
      %c0_31 = arith.constant 0 : index
      %c0_32 = arith.constant 0 : index
      %46 = vector.load %arg9[%c0_31, %c0_32] : memref<8x128xf32, #tpu.memory_space<vmem>>, vector<8x128xf32>
      tpu.vector_store %arg9[%c0_31, %c0_32], %45 {strides = array<i32>} : memref<8x128xf32, #tpu.memory_space<vmem>>, vector<8x128xf32>,
      %cst_33 = arith.constant 0.000000e+00 : f32
      %47 = vector.broadcast %cst_33 : f32 to vector<8x128xf32>
      %c0_34 = arith.constant 0 : index
      %c0_35 = arith.constant 0 : index
      %48 = vector.load %arg10[%c0_34, %c0_35] : memref<8x128xf32, #tpu.memory_space<vmem>>, vector<8x128xf32>
      tpu.vector_store %arg10[%c0_34, %c0_35], %47 {strides = array<i32>} : memref<8x128xf32, #tpu.memory_space<vmem>>, vector<8x128xf32>,
    } else {
    }
    %c0 = arith.constant 0 : index
    %c0_1 = arith.constant 0 : index
    %c0_2 = arith.constant 0 : index
    %c0_3 = arith.constant 0 : index
    %3 = vector.load %arg3[%c0, %c0_1, %c0_2, %c0_3] : memref<1x4x8x128xf32, #tpu.memory_space<vmem>>, vector<1x4x8x128xf32>
    %4 = vector.shape_cast %3 : vector<1x4x8x128xf32> to vector<4x8x128xf32>
    %c0_4 = arith.constant 0 : index
    %c0_5 = arith.constant 0 : index
    %c0_6 = arith.constant 0 : index
    %c0_7 = arith.constant 0 : index
    %5 = vector.load %arg4[%c0_4, %c0_5, %c0_6, %c0_7] : memref<1x4x8x128xf32, #tpu.memory_space<vmem>>, vector<1x4x8x128xf32>
    %6 = vector.shape_cast %5 : vector<1x4x8x128xf32> to vector<4x8x128xf32>
    %cst = arith.constant dense<0xFF800000> : vector<8x128xf32>
    %7 = vector.multi_reduction <maximumf>, %4, %cst [0] : vector<4x8x128xf32> to vector<8x128xf32>
    %8 = vector.shape_cast %7 : vector<8x128xf32> to vector<1x8x128xf32>
    %9 = vector.broadcast %8 : vector<1x8x128xf32> to vector<4x8x128xf32>
    %10 = arith.subf %4, %9 : vector<4x8x128xf32>
    %11 = math.exp %10 : vector<4x8x128xf32>
    %cst_8 = arith.constant dense<0.000000e+00> : vector<8x128xf32>
    %12 = vector.multi_reduction <add>, %11, %cst_8 [0] : vector<4x8x128xf32> to vector<8x128xf32>
    %13 = math.log %12 : vector<8x128xf32>
    %14 = arith.addf %7, %13 : vector<8x128xf32>
    %cst_9 = arith.constant dense<0.000000e+00> : vector<8x128xf32>
    %15 = vector.multi_reduction <add>, %6, %cst_9 [0] : vector<4x8x128xf32> to vector<8x128xf32>
    %16 = arith.mulf %6, %4 : vector<4x8x128xf32>
    %cst_10 = arith.constant dense<0.000000e+00> : vector<8x128xf32>
    %17 = vector.multi_reduction <add>, %16, %cst_10 [0] : vector<4x8x128xf32> to vector<8x128xf32>
    %18 = arith.mulf %14, %15 : vector<8x128xf32>
    %19 = arith.subf %18, %17 : vector<8x128xf32>
    %cst_11 = arith.constant 0.000000e+00 : f32
    %20 = vector.broadcast %cst_11 : f32 to vector<4x8x128xf32>
    %21 = arith.maximumf %4, %20 : vector<4x8x128xf32>
    %22 = arith.mulf %21, %6 : vector<4x8x128xf32>
    %cst_12 = arith.constant dense<0.000000e+00> : vector<8x128xf32>
    %23 = vector.multi_reduction <add>, %22, %cst_12 [0] : vector<4x8x128xf32> to vector<8x128xf32>
    %cst_13 = arith.constant dense<0.000000e+00> : vector<8x128xf32>
    %24 = vector.multi_reduction <add>, %21, %cst_13 [0] : vector<4x8x128xf32> to vector<8x128xf32>
    %cst_14 = arith.constant dense<0xFF800000> : vector<8x128xf32>
    %25 = vector.multi_reduction <maximumf>, %21, %cst_14 [0] : vector<4x8x128xf32> to vector<8x128xf32>
    %c1_i32 = arith.constant 1 : i32
    %26 = arith.muli %arg1, %c1_i32 : i32
    %27 = arith.addi %26, %arg2 : i32
    %c8_i32 = arith.constant 8 : i32
    %28 = arith.muli %27, %c8_i32 : i32
    %c2_i32 = arith.constant 2 : i32
    %29 = arith.subi %c2_i32, %28 : i32
    %c8_i32_15 = arith.constant 8 : i32
    %30 = arith.cmpi sge, %29, %c8_i32_15 : i32
    %31 = arith.extui %30 : i1 to i32
    %c0_i32_16 = arith.constant 0 : i32
    %32 = arith.cmpi ne, %31, %c0_i32_16 : i32
    scf.if %32 {
      %c0_21 = arith.constant 0 : index
      %c0_22 = arith.constant 0 : index
      %39 = vector.load %arg6[%c0_21, %c0_22] : memref<8x128xf32, #tpu.memory_space<vmem>>, vector<8x128xf32>
      %40 = vector.shape_cast %19 : vector<8x128xf32> to vector<1x8x128xf32>
      %cst_23 = arith.constant dense<0.000000e+00> : vector<8x128xf32>
      %41 = vector.multi_reduction <add>, %40, %cst_23 [0] : vector<1x8x128xf32> to vector<8x128xf32>
      %42 = arith.addf %39, %41 : vector<8x128xf32>
      %c0_24 = arith.constant 0 : index
      %c0_25 = arith.constant 0 : index
      %43 = vector.load %arg6[%c0_24, %c0_25] : memref<8x128xf32, #tpu.memory_space<vmem>>, vector<8x128xf32>
      tpu.vector_store %arg6[%c0_24, %c0_25], %42 {strides = array<i32>} : memref<8x128xf32, #tpu.memory_space<vmem>>, vector<8x128xf32>,
      %c0_26 = arith.constant 0 : index
      %c0_27 = arith.constant 0 : index
      %44 = vector.load %arg7[%c0_26, %c0_27] : memref<8x128xf32, #tpu.memory_space<vmem>>, vector<8x128xf32>
      %45 = vector.shape_cast %23 : vector<8x128xf32> to vector<1x8x128xf32>
      %cst_28 = arith.constant dense<0.000000e+00> : vector<8x128xf32>
      %46 = vector.multi_reduction <add>, %45, %cst_28 [0] : vector<1x8x128xf32> to vector<8x128xf32>
      %47 = arith.addf %44, %46 : vector<8x128xf32>
      %c0_29 = arith.constant 0 : index
      %c0_30 = arith.constant 0 : index
      %48 = vector.load %arg7[%c0_29, %c0_30] : memref<8x128xf32, #tpu.memory_space<vmem>>, vector<8x128xf32>
      tpu.vector_store %arg7[%c0_29, %c0_30], %47 {strides = array<i32>} : memref<8x128xf32, #tpu.memory_space<vmem>>, vector<8x128xf32>,
      %c0_31 = arith.constant 0 : index
      %c0_32 = arith.constant 0 : index
      %49 = vector.load %arg8[%c0_31, %c0_32] : memref<8x128xf32, #tpu.memory_space<vmem>>, vector<8x128xf32>
      %50 = vector.shape_cast %24 : vector<8x128xf32> to vector<1x8x128xf32>
      %cst_33 = arith.constant dense<0.000000e+00> : vector<8x128xf32>
      %51 = vector.multi_reduction <add>, %50, %cst_33 [0] : vector<1x8x128xf32> to vector<8x128xf32>
      %52 = arith.addf %49, %51 : vector<8x128xf32>
      %c0_34 = arith.constant 0 : index
      %c0_35 = arith.constant 0 : index
      %53 = vector.load %arg8[%c0_34, %c0_35] : memref<8x128xf32, #tpu.memory_space<vmem>>, vector<8x128xf32>
      tpu.vector_store %arg8[%c0_34, %c0_35], %52 {strides = array<i32>} : memref<8x128xf32, #tpu.memory_space<vmem>>, vector<8x128xf32>,
      %c0_36 = arith.constant 0 : index
      %c0_37 = arith.constant 0 : index
      %54 = vector.load %arg9[%c0_36, %c0_37] : memref<8x128xf32, #tpu.memory_space<vmem>>, vector<8x128xf32>
      %55 = vector.shape_cast %15 : vector<8x128xf32> to vector<1x8x128xf32>
      %cst_38 = arith.constant dense<0.000000e+00> : vector<8x128xf32>
      %56 = vector.multi_reduction <add>, %55, %cst_38 [0] : vector<1x8x128xf32> to vector<8x128xf32>
      %57 = arith.addf %54, %56 : vector<8x128xf32>
      %c0_39 = arith.constant 0 : index
      %c0_40 = arith.constant 0 : index
      %58 = vector.load %arg9[%c0_39, %c0_40] : memref<8x128xf32, #tpu.memory_space<vmem>>, vector<8x128xf32>
      tpu.vector_store %arg9[%c0_39, %c0_40], %57 {strides = array<i32>} : memref<8x128xf32, #tpu.memory_space<vmem>>, vector<8x128xf32>,
      %c0_41 = arith.constant 0 : index
      %c0_42 = arith.constant 0 : index
      %59 = vector.load %arg10[%c0_41, %c0_42] : memref<8x128xf32, #tpu.memory_space<vmem>>, vector<8x128xf32>
      %60 = vector.shape_cast %25 : vector<8x128xf32> to vector<1x8x128xf32>
      %cst_43 = arith.constant dense<0xFF800000> : vector<8x128xf32>
      %61 = vector.multi_reduction <maximumf>, %60, %cst_43 [0] : vector<1x8x128xf32> to vector<8x128xf32>
      %62 = arith.maximumf %59, %61 : vector<8x128xf32>
      %c0_44 = arith.constant 0 : index
      %c0_45 = arith.constant 0 : index
      %63 = vector.load %arg10[%c0_44, %c0_45] : memref<8x128xf32, #tpu.memory_space<vmem>>, vector<8x128xf32>
      tpu.vector_store %arg10[%c0_44, %c0_45], %62 {strides = array<i32>} : memref<8x128xf32, #tpu.memory_space<vmem>>, vector<8x128xf32>,
    } else {
    }
    %c8_i32_17 = arith.constant 8 : i32
    %33 = arith.cmpi slt, %29, %c8_i32_17 : i32
    %34 = arith.extui %33 : i1 to i32
    %c0_i32_18 = arith.constant 0 : i32
    %35 = arith.cmpi ne, %34, %c0_i32_18 : i32
    scf.if %35 {
      %39 = tpu.iota {dimensions = array<i32: 0>} : vector<8x128xi32>
      %40 = vector.broadcast %29 : i32 to vector<8x128xi32>
      %41 = arith.cmpi slt, %39, %40 : vector<8x128xi32>
      %cst_21 = arith.constant 0.000000e+00 : f32
      %42 = vector.broadcast %cst_21 : f32 to vector<8x128xf32>
      %43 = arith.select %41, %19, %42 : vector<8x128xi1>, vector<8x128xf32>
      %44 = arith.select %41, %23, %42 : vector<8x128xi1>, vector<8x128xf32>
      %45 = arith.select %41, %24, %42 : vector<8x128xi1>, vector<8x128xf32>
      %46 = arith.select %41, %15, %42 : vector<8x128xi1>, vector<8x128xf32>
      %47 = arith.select %41, %25, %42 : vector<8x128xi1>, vector<8x128xf32>
      %c0_22 = arith.constant 0 : index
      %c0_23 = arith.constant 0 : index
      %48 = vector.load %arg6[%c0_22, %c0_23] : memref<8x128xf32, #tpu.memory_space<vmem>>, vector<8x128xf32>
      %49 = vector.shape_cast %43 : vector<8x128xf32> to vector<1x8x128xf32>
      %cst_24 = arith.constant dense<0.000000e+00> : vector<8x128xf32>
      %50 = vector.multi_reduction <add>, %49, %cst_24 [0] : vector<1x8x128xf32> to vector<8x128xf32>
      %51 = arith.addf %48, %50 : vector<8x128xf32>
      %c0_25 = arith.constant 0 : index
      %c0_26 = arith.constant 0 : index
      %52 = vector.load %arg6[%c0_25, %c0_26] : memref<8x128xf32, #tpu.memory_space<vmem>>, vector<8x128xf32>
      tpu.vector_store %arg6[%c0_25, %c0_26], %51 {strides = array<i32>} : memref<8x128xf32, #tpu.memory_space<vmem>>, vector<8x128xf32>,
      %c0_27 = arith.constant 0 : index
      %c0_28 = arith.constant 0 : index
      %53 = vector.load %arg7[%c0_27, %c0_28] : memref<8x128xf32, #tpu.memory_space<vmem>>, vector<8x128xf32>
      %54 = vector.shape_cast %44 : vector<8x128xf32> to vector<1x8x128xf32>
      %cst_29 = arith.constant dense<0.000000e+00> : vector<8x128xf32>
      %55 = vector.multi_reduction <add>, %54, %cst_29 [0] : vector<1x8x128xf32> to vector<8x128xf32>
      %56 = arith.addf %53, %55 : vector<8x128xf32>
      %c0_30 = arith.constant 0 : index
      %c0_31 = arith.constant 0 : index
      %57 = vector.load %arg7[%c0_30, %c0_31] : memref<8x128xf32, #tpu.memory_space<vmem>>, vector<8x128xf32>
      tpu.vector_store %arg7[%c0_30, %c0_31], %56 {strides = array<i32>} : memref<8x128xf32, #tpu.memory_space<vmem>>, vector<8x128xf32>,
      %c0_32 = arith.constant 0 : index
      %c0_33 = arith.constant 0 : index
      %58 = vector.load %arg8[%c0_32, %c0_33] : memref<8x128xf32, #tpu.memory_space<vmem>>, vector<8x128xf32>
      %59 = vector.shape_cast %45 : vector<8x128xf32> to vector<1x8x128xf32>
      %cst_34 = arith.constant dense<0.000000e+00> : vector<8x128xf32>
      %60 = vector.multi_reduction <add>, %59, %cst_34 [0] : vector<1x8x128xf32> to vector<8x128xf32>
      %61 = arith.addf %58, %60 : vector<8x128xf32>
      %c0_35 = arith.constant 0 : index
      %c0_36 = arith.constant 0 : index
      %62 = vector.load %arg8[%c0_35, %c0_36] : memref<8x128xf32, #tpu.memory_space<vmem>>, vector<8x128xf32>
      tpu.vector_store %arg8[%c0_35, %c0_36], %61 {strides = array<i32>} : memref<8x128xf32, #tpu.memory_space<vmem>>, vector<8x128xf32>,
      %c0_37 = arith.constant 0 : index
      %c0_38 = arith.constant 0 : index
      %63 = vector.load %arg9[%c0_37, %c0_38] : memref<8x128xf32, #tpu.memory_space<vmem>>, vector<8x128xf32>
      %64 = vector.shape_cast %46 : vector<8x128xf32> to vector<1x8x128xf32>
      %cst_39 = arith.constant dense<0.000000e+00> : vector<8x128xf32>
      %65 = vector.multi_reduction <add>, %64, %cst_39 [0] : vector<1x8x128xf32> to vector<8x128xf32>
      %66 = arith.addf %63, %65 : vector<8x128xf32>
      %c0_40 = arith.constant 0 : index
      %c0_41 = arith.constant 0 : index
      %67 = vector.load %arg9[%c0_40, %c0_41] : memref<8x128xf32, #tpu.memory_space<vmem>>, vector<8x128xf32>
      tpu.vector_store %arg9[%c0_40, %c0_41], %66 {strides = array<i32>} : memref<8x128xf32, #tpu.memory_space<vmem>>, vector<8x128xf32>,
      %c0_42 = arith.constant 0 : index
      %c0_43 = arith.constant 0 : index
      %68 = vector.load %arg10[%c0_42, %c0_43] : memref<8x128xf32, #tpu.memory_space<vmem>>, vector<8x128xf32>
      %69 = vector.shape_cast %47 : vector<8x128xf32> to vector<1x8x128xf32>
      %cst_44 = arith.constant dense<0xFF800000> : vector<8x128xf32>
      %70 = vector.multi_reduction <maximumf>, %69, %cst_44 [0] : vector<1x8x128xf32> to vector<8x128xf32>
      %71 = arith.maximumf %68, %70 : vector<8x128xf32>
      %c0_45 = arith.constant 0 : index
      %c0_46 = arith.constant 0 : index
      %72 = vector.load %arg10[%c0_45, %c0_46] : memref<8x128xf32, #tpu.memory_space<vmem>>, vector<8x128xf32>
      tpu.vector_store %arg10[%c0_45, %c0_46], %71 {strides = array<i32>} : memref<8x128xf32, #tpu.memory_space<vmem>>, vector<8x128xf32>,
    } else {
    }
    %c0_i32_19 = arith.constant 0 : i32
    %36 = arith.cmpi eq, %arg2, %c0_i32_19 : i32
    %37 = arith.extui %36 : i1 to i32
    %c0_i32_20 = arith.constant 0 : i32
    %38 = arith.cmpi ne, %37, %c0_i32_20 : i32
    scf.if %38 {
      %c0_21 = arith.constant 0 : index
      %c0_22 = arith.constant 0 : index
      %39 = vector.load %arg6[%c0_21, %c0_22] : memref<8x128xf32, #tpu.memory_space<vmem>>, vector<8x128xf32>
      %40 = vector.shape_cast %39 : vector<8x128xf32> to vector<1x8x128xf32>
      %cst_23 = arith.constant dense<0.000000e+00> : vector<1xf32>
      %41 = vector.multi_reduction <add>, %40, %cst_23 [1, 2] : vector<1x8x128xf32> to vector<1xf32>
      %42 = vector.shape_cast %41 : vector<1xf32> to vector<1x1x1xf32>
      %43 = vector.extract %42[0, 0, 0] : f32 from vector<1x1x1xf32>
      %c0_24 = arith.constant 0 : index
      %c0_25 = arith.constant 0 : index
      %44 = vector.load %arg7[%c0_24, %c0_25] : memref<8x128xf32, #tpu.memory_space<vmem>>, vector<8x128xf32>
      %45 = vector.shape_cast %44 : vector<8x128xf32> to vector<1x8x128xf32>
      %cst_26 = arith.constant dense<0.000000e+00> : vector<1xf32>
      %46 = vector.multi_reduction <add>, %45, %cst_26 [1, 2] : vector<1x8x128xf32> to vector<1xf32>
      %47 = vector.shape_cast %46 : vector<1xf32> to vector<1x1x1xf32>
      %48 = vector.extract %47[0, 0, 0] : f32 from vector<1x1x1xf32>
      %c0_27 = arith.constant 0 : index
      %c0_28 = arith.constant 0 : index
      %49 = vector.load %arg8[%c0_27, %c0_28] : memref<8x128xf32, #tpu.memory_space<vmem>>, vector<8x128xf32>
      %50 = vector.shape_cast %49 : vector<8x128xf32> to vector<1x8x128xf32>
      %cst_29 = arith.constant dense<0.000000e+00> : vector<1xf32>
      %51 = vector.multi_reduction <add>, %50, %cst_29 [1, 2] : vector<1x8x128xf32> to vector<1xf32>
      %52 = vector.shape_cast %51 : vector<1xf32> to vector<1x1x1xf32>
      %53 = vector.extract %52[0, 0, 0] : f32 from vector<1x1x1xf32>
      %c0_30 = arith.constant 0 : index
      %c0_31 = arith.constant 0 : index
      %54 = vector.load %arg9[%c0_30, %c0_31] : memref<8x128xf32, #tpu.memory_space<vmem>>, vector<8x128xf32>
      %55 = vector.shape_cast %54 : vector<8x128xf32> to vector<1x8x128xf32>
      %cst_32 = arith.constant dense<0.000000e+00> : vector<1xf32>
      %56 = vector.multi_reduction <add>, %55, %cst_32 [1, 2] : vector<1x8x128xf32> to vector<1xf32>
      %57 = vector.shape_cast %56 : vector<1xf32> to vector<1x1x1xf32>
      %58 = vector.extract %57[0, 0, 0] : f32 from vector<1x1x1xf32>
      %c0_33 = arith.constant 0 : index
      %c0_34 = arith.constant 0 : index
      %59 = vector.load %arg10[%c0_33, %c0_34] : memref<8x128xf32, #tpu.memory_space<vmem>>, vector<8x128xf32>
      %60 = vector.shape_cast %59 : vector<8x128xf32> to vector<1x8x128xf32>
      %cst_35 = arith.constant dense<0xFF800000> : vector<1xf32>
      %61 = vector.multi_reduction <maximumf>, %60, %cst_35 [1, 2] : vector<1x8x128xf32> to vector<1xf32>
      %62 = vector.shape_cast %61 : vector<1xf32> to vector<1x1x1xf32>
      %63 = vector.extract %62[0, 0, 0] : f32 from vector<1x1x1xf32>
      %64 = tpu.iota {dimensions = array<i32: 1>} : vector<8x128xi32>
      %c0_i32_36 = arith.constant 0 : i32
      %65 = vector.broadcast %c0_i32_36 : i32 to vector<8x128xi32>
      %66 = arith.cmpi eq, %64, %65 : vector<8x128xi32>
      %cst_37 = arith.constant 0.000000e+00 : f32
      %67 = vector.broadcast %43 : f32 to vector<8x128xf32>
      %68 = vector.broadcast %cst_37 : f32 to vector<8x128xf32>
      %69 = arith.select %66, %67, %68 : vector<8x128xi1>, vector<8x128xf32>
      %c1_i32_38 = arith.constant 1 : i32
      %70 = vector.broadcast %c1_i32_38 : i32 to vector<8x128xi32>
      %71 = arith.cmpi eq, %64, %70 : vector<8x128xi32>
      %cst_39 = arith.constant 0.000000e+00 : f32
      %72 = vector.broadcast %48 : f32 to vector<8x128xf32>
      %73 = vector.broadcast %cst_39 : f32 to vector<8x128xf32>
      %74 = arith.select %71, %72, %73 : vector<8x128xi1>, vector<8x128xf32>
      %75 = arith.addf %69, %74 : vector<8x128xf32>
      %c2_i32_40 = arith.constant 2 : i32
      %76 = vector.broadcast %c2_i32_40 : i32 to vector<8x128xi32>
      %77 = arith.cmpi eq, %64, %76 : vector<8x128xi32>
      %cst_41 = arith.constant 0.000000e+00 : f32
      %78 = vector.broadcast %53 : f32 to vector<8x128xf32>
      %79 = vector.broadcast %cst_41 : f32 to vector<8x128xf32>
      %80 = arith.select %77, %78, %79 : vector<8x128xi1>, vector<8x128xf32>
      %81 = arith.addf %75, %80 : vector<8x128xf32>
      %c3_i32 = arith.constant 3 : i32
      %82 = vector.broadcast %c3_i32 : i32 to vector<8x128xi32>
      %83 = arith.cmpi eq, %64, %82 : vector<8x128xi32>
      %cst_42 = arith.constant 0.000000e+00 : f32
      %84 = vector.broadcast %58 : f32 to vector<8x128xf32>
      %85 = vector.broadcast %cst_42 : f32 to vector<8x128xf32>
      %86 = arith.select %83, %84, %85 : vector<8x128xi1>, vector<8x128xf32>
      %87 = arith.addf %81, %86 : vector<8x128xf32>
      %c4_i32 = arith.constant 4 : i32
      %88 = vector.broadcast %c4_i32 : i32 to vector<8x128xi32>
      %89 = arith.cmpi eq, %64, %88 : vector<8x128xi32>
      %cst_43 = arith.constant 0.000000e+00 : f32
      %90 = vector.broadcast %63 : f32 to vector<8x128xf32>
      %91 = vector.broadcast %cst_43 : f32 to vector<8x128xf32>
      %92 = arith.select %89, %90, %91 : vector<8x128xi1>, vector<8x128xf32>
      %93 = arith.addf %87, %92 : vector<8x128xf32>
      %c0_44 = arith.constant 0 : index
      %c0_45 = arith.constant 0 : index
      %c0_46 = arith.constant 0 : index
      %c0_47 = arith.constant 0 : index
      %94 = vector.load %arg5[%c0_44, %c0_45, %c0_46, %c0_47] : memref<1x1x8x128xf32, #tpu.memory_space<vmem>>, vector<1x1x8x128xf32>
      %95 = vector.shape_cast %94 : vector<1x1x8x128xf32> to vector<8x128xf32>
      %96 = vector.shape_cast %93 : vector<8x128xf32> to vector<1x1x8x128xf32>
      tpu.vector_store %arg5[%c0_44, %c0_45, %c0_46, %c0_47], %96 {strides = array<i32>} : memref<1x1x8x128xf32, #tpu.memory_space<vmem>>, vector<1x1x8x128xf32>,
    } else {
    }
    return
  }
  func.func @transform_0(%arg0: i32, %arg1: i32, %arg2: i32) -> (i32, i32, i32, i32) {
    %c1_i32 = arith.constant 1 : i32
    %0 = arith.muli %arg1, %c1_i32 : i32
    %1 = arith.addi %0, %arg2 : i32
    %c0_i32 = arith.constant 0 : i32
    %c0_i32_0 = arith.constant 0 : i32
    %c0_i32_1 = arith.constant 0 : i32
    return %arg0, %c0_i32, %1, %c0_i32_0 : i32, i32, i32, i32
  }
  func.func @transform_1(%arg0: i32, %arg1: i32, %arg2: i32) -> (i32, i32, i32, i32) {
    %c1_i32 = arith.constant 1 : i32
    %0 = arith.muli %arg1, %c1_i32 : i32
    %1 = arith.addi %0, %arg2 : i32
    %c0_i32 = arith.constant 0 : i32
    %c0_i32_0 = arith.constant 0 : i32
    %c0_i32_1 = arith.constant 0 : i32
    return %arg0, %c0_i32, %1, %c0_i32_0 : i32, i32, i32, i32
  }
  func.func @transform_2(%arg0: i32, %arg1: i32, %arg2: i32) -> (i32, i32, i32, i32) {
    %c0_i32 = arith.constant 0 : i32
    %c0_i32_0 = arith.constant 0 : i32
    %c0_i32_1 = arith.constant 0 : i32
    return %arg0, %arg1, %c0_i32, %c0_i32_0 : i32, i32, i32, i32
  }
}

</mosaic_0001>

<bundles_post_ra>
// kernel: dice_cross_entropy_loss.1
= control target key start
LH: loop header
LB: loop body
LE: loop exit
PB: predicated region body
PF: predicated region fallthrough
CT: control target
= control target key end

     0   :  { %s966_s9 = smov 0   ;;  %s968_s10 = smov 0   ;;  %s1075_s0 = inlined_call_operand.vmem [shape: f32[2,4,2,128], index: 0, kind: input, shape index: {}]   ;;  %s1076_s1 = inlined_call_operand.vmem [shape: f32[2,4,2,128], index: 1, kind: input, shape index: {}]   ;;  %s1077_s2 = inlined_call_operand.vmem [shape: f32[2,1,8,128], index: 2, kind: output, shape index: {}]  }
   0x1   :  { %s970_s11 = smov 0   ;;  %s972_s12 = smov 0  }
   0x2   :  { %s974_s13 = smov 0  }
   0x3 LB: > { %s31_s14 = sadd.s32 1, %s937_s12  ;;  %p49_p1 = scmp.ne.s32.totalorder %s929_s10, %s925_s9  ;;  %s941_s13 = sphi %s974_s13, %s12_s13   ;;  %s937_s12 = sphi %s972_s12, %s1082_s12   ;;  %s933_s11 = sphi %s970_s11, %s1081_s11   ;;  %s929_s10 = sphi %s968_s10, %s1080_s10   ;;  %s925_s9 = sphi %s966_s9, %s1079_s9  }
   0x4   : > { %p33_p0 = scmp.ge.s32.totalorder %s31_s14, 2  ;;  %p50_p2 = scmp.eq.s32.totalorder %s941_s13, 0 }
   0x5   : > { %s42_s17 = sadd.s32 1, %s929_s10  ;;  %p728_p5 = scmp.ge.s32.totalorder %s941_s13, 2 }
   0x6   : > { %s1084_s14 = smov (%p33_p0, %s31_s14), 0  ;;  %p997_p3 = por %p50_p2, %p49_p1 }
   0x7   : > { %s37_s16 = ssub.s32 %s937_s12, %s1084_s14  ;;  %133 = sbr.rel (%p728_p5) target bundleno = 50 (0x32), region = 16 }
   0x8   : > { %p40_p4 = scmp.eq.s32.totalorder %s37_s16, 0 }
   0xa   : > { %s1005_s18 = scalar_select %p40_p4, %s929_s10, %s42_s17  }
   0xe   : > { %136 = sbr.rel (!%p997_p3) target bundleno = 32 (0x20), region = 20  ;;  %s138_s19 = sand.u32 (%p997_p3), 1, %s929_s10  }
   0xf   : > { %s745_s20 = sshll.u32 (%p997_p3), %s937_s12, 3  ;;  %s729_s21 = sshll.u32 (%p997_p3), %s138_s19, 5 }
  0x10   : > { %s149_s24 = scalar_lea.vmem (%p997_p3), %s1075_s0, %s745_s20   ;;  %s140_s25 = scalar_lea.vmem (%p997_p3), [#allocation7], %s729_s21  }
  0x11   : > { %s943_s26 = smov (%p997_p3), 0  }
  0x15 LB: >> { %v167_v0 = vld [vmem:[%s149_s24] sm:$0x3]  ;;  %v169_v1 = vld [vmem:[%s149_s24 + $0x2] sm:$0x3]  ;;  %v171_v2 = vld [vmem:[%s149_s24 + $0x4] sm:$0x3]  ;;  %s945_s26 = sphi %s943_s26, %s161_s26  }
  0x16   : >> { %168 = vst [vmem:[%s140_s25] sm:$0x3] %v167_v0  ;;  %170 = vst [vmem:[%s140_s25 + $0x8] sm:$0x3] %v169_v1  ;;  %v173_v3 = vld [vmem:[%s149_s24 + $0x6] sm:$0x3]  ;;  %s161_s26 = sadd.s32 1, %s945_s26  }
  0x17   : >> { %172 = vst [vmem:[%s140_s25 + $0x10] sm:$0x3] %v171_v2  ;;  %174 = vst [vmem:[%s140_s25 + $0x18] sm:$0x3] %v173_v3  ;;  %p160_p6 = scmp.ge.s32.totalorder %s161_s26, 1 }
  0x19   : > { %163 = sbr.rel (!%p160_p6) target bundleno = 21 (0x15), region = 173 }
  0x20 PF: > { %228 = sbr.rel (!%p997_p3) target bundleno = 50 (0x32), region = 61  ;;  %s230_s27 = sand.u32 (%p997_p3), 1, %s929_s10  }
  0x21   : > { %s746_s28 = sshll.u32 (%p997_p3), %s937_s12, 3  ;;  %s734_s29 = sshll.u32 (%p997_p3), %s230_s27, 5 }
  0x22   : > { %s241_s4 = scalar_lea.vmem (%p997_p3), %s1076_s1, %s746_s28   ;;  %s232_s5 = scalar_lea.vmem (%p997_p3), [#allocation8], %s734_s29  }
  0x23   : > { %s947_s6 = smov (%p997_p3), 0  }
  0x27 LB: >> { %v259_v4 = vld [vmem:[%s241_s4] sm:$0x3]  ;;  %v261_v5 = vld [vmem:[%s241_s4 + $0x2] sm:$0x3]  ;;  %v263_v6 = vld [vmem:[%s241_s4 + $0x4] sm:$0x3]  ;;  %s949_s6 = sphi %s947_s6, %s253_s6  }
  0x28   : >> { %260 = vst [vmem:[%s232_s5] sm:$0x3] %v259_v4  ;;  %262 = vst [vmem:[%s232_s5 + $0x8] sm:$0x3] %v261_v5  ;;  %v265_v7 = vld [vmem:[%s241_s4 + $0x6] sm:$0x3]  ;;  %s253_s6 = sadd.s32 1, %s949_s6  }
  0x29   : >> { %264 = vst [vmem:[%s232_s5 + $0x10] sm:$0x3] %v263_v6  ;;  %266 = vst [vmem:[%s232_s5 + $0x18] sm:$0x3] %v265_v7  ;;  %p252_p7 = scmp.ge.s32.totalorder %s253_s6, 1 }
  0x2b   : > { %255 = sbr.rel (!%p252_p7) target bundleno = 39 (0x27), region = 184 }
  0x32 PF: > { %p739_p8 = scmp.ge.s32.totalorder %s941_s13, 1  ;;  %p319_p9 = scmp.lt.s32.totalorder %s941_s13, 3 }
  0x34   : > { %p320_p10 = pnand %p739_p8, %p319_p9 }
  0x35   : > { %s326_s7 = sand.u32 (!%p320_p10), 1, %s925_s9   ;;  %v472_v8 = vlaneseq (!%p320_p10)  ;;  %p368_p11 = scmp.lt.s32.totalorder (!%p320_p10), %s933_s11, 1 }
  0x36   : > { %323 = sbr.rel (%p320_p10) target bundleno = 323 (0x143), region = 102  ;;  %s740_s8 = sshll.u32 (!%p320_p10), %s326_s7, 5 }
  0x37   : > { %s328_s15 = scalar_lea.vmem (!%p320_p10), [#allocation7], %s740_s8  ;;  %v1032_v16 = vshrl.u32 (!%p320_p10), %v472_v8, 7  ;;  %s335_s16 = scalar_lea.vmem (!%p320_p10), [#allocation8], %s740_s8 }
  0x38   : > { %v384_v9 = vld [vmem:[%s328_s15] sm:$0xff] (!%p320_p10)  ;;  %v385_v10 = vld [vmem:[%s328_s15 + $0x8] sm:$0xff] (!%p320_p10)  ;;  %v386_v11 = vld [vmem:[%s328_s15 + $0x10] sm:$0xff] (!%p320_p10) }
  0x39   : > { %v387_v12 = vld [vmem:[%s328_s15 + $0x18] sm:$0xff] (!%p320_p10)  ;;  %v1025_v13 = vmax.f32 (!%p320_p10), %v384_v9, 0.0  ;;  %v1027_v14 = vmax.f32 (!%p320_p10), %v385_v10, 0.0  ;;  %v1029_v15 = vmax.f32 (!%p320_p10), %v386_v11, 0.0  ;;  %v388_v17 = vld [vmem:[%s335_s16] sm:$0xff] (!%p320_p10)  ;;  %v392_v19 = vmax.f32 (!%p320_p10), %v384_v9, %v385_v10  ;;  %v389_v20 = vld [vmem:[%s335_s16 + $0x8] sm:$0xff] (!%p320_p10) }
  0x3a   : > { %v393_v18 = vmax.f32 (!%p320_p10), %v386_v11, %v387_v12  ;;  %v390_v21 = vld [vmem:[%s335_s16 + $0x10] sm:$0xff] (!%p320_p10)  ;;  %v428_v22 = vmax.f32 (!%p320_p10), %v387_v12, 0.0  ;;  %v413_v24 = vadd.f32 (!%p320_p10), %v389_v20, %v388_v17  ;;  %vm475_vm0 = vcmp.lt.s32.totalorder (!%p320_p10), %v1032_v16, 2  ;;  %v391_v32 = vld [vmem:[%s335_s16 + $0x18] sm:$0xff] (!%p320_p10) }
  0x3b   : > { %v436_v23 = vadd.f32 (!%p320_p10), %v1027_v14, %v1025_v13  ;;  %v416_v48 = vmul.f32 (!%p320_p10), %v388_v17, %v384_v9  ;;  %v417_v49 = vmul.f32 (!%p320_p10), %v389_v20, %v385_v10  ;;  %v418_v50 = vmul.f32 (!%p320_p10), %v390_v21, %v386_v11 }
  0x3c   : > { %v394_v25 = vmax.f32 (!%p320_p10), %v392_v19, %v393_v18  ;;  %v414_v27 = vadd.f32 (!%p320_p10), %v413_v24, %v390_v21  ;;  %v429_v52 = vmul.f32 (!%p320_p10), %v1025_v13, %v388_v17  ;;  %v430_v53 = vmul.f32 (!%p320_p10), %v1027_v14, %v389_v20 }
  0x3d   : > { %v437_v26 = vadd.f32 %v436_v23, %v1029_v15  ;;  %v420_v51 = vadd.f32 %v417_v49, %v416_v48  ;;  %v419_v54 = vmul.f32 %v391_v32, %v387_v12  ;;  %v431_v56 = vmul.f32 %v1029_v15, %v390_v21  ;;  %s1086_s11 = smov (!%p368_p11, %s933_s11), 1 }
  0x3e   : > { %v395_v28 = vsub.f32 %v384_v9, %v394_v25  ;;  %v396_v29 = vsub.f32 %v385_v10, %v394_v25  ;;  %v397_v30 = vsub.f32 %v386_v11, %v394_v25  ;;  %v398_v31 = vsub.f32 %v387_v12, %v394_v25  ;;  %s742_s22 = sshll.u32 %s1086_s11, 3 }
  0x3f   : > { %v438_v33 = vadd.f32 %v437_v26, %v428_v22  ;;  %v415_v39 = vadd.f32 %v414_v27, %v391_v32  ;;  %v421_v55 = vadd.f32 %v420_v51, %v418_v50  ;;  %v433_v57 = vadd.f32 %v430_v53, %v429_v52  ;;  %s374_s25 = scalar_lea.vmem %s1077_s2, %s742_s22 }
  0x40   : > { %v399_v34 = vmul.f32 1.442695, %v395_v28  ;;  %v401_v35 = vmul.f32 1.442695, %v396_v29  ;;  %v403_v36 = vmul.f32 1.442695, %v397_v30  ;;  %v432_v61 = vmul.f32 %v428_v22, %v391_v32 }
  0x41   : > { %v478_v37 = vsel %vm475_vm0, %v438_v33, 0.0  ;;  %v405_v38 = vmul.f32 1.442695, %v398_v31  ;;  %v479_v40 = vsel %vm475_vm0, %v415_v39, 0.0  ;;  %v422_v60 = vadd.f32 %v421_v55, %v419_v54 }
  0x42   : > { %524 = vadd.xlane.f32.xlu1 %v478_v37  ;;  %861 = vpow2.f32 %v399_v34  ;;  %v434_v63 = vadd.f32 %v433_v57, %v431_v56  ;;  %v439_v0 = vmax.f32 %v1025_v13, %v1027_v14  ;;  %v440_v1 = vmax.f32 %v1029_v15, %v428_v22 }
  0x43   : > { %863 = vpow2.f32 %v401_v35 }
  0x44   : > { %865 = vpow2.f32 %v403_v36  ;;  %v435_v4 = vadd.f32 %v434_v63, %v432_v61  ;;  %v441_v5 = vmax.f32 %v439_v0, %v440_v1 }
  0x45   : > { %867 = vpow2.f32 %v405_v38 }
  0x46   : > { %534 = vadd.xlane.f32.xlu1 %v479_v40  ;;  %v477_v7 = vsel %vm475_vm0, %v435_v4, 0.0  ;;  %v480_v9 = vsel %vm475_vm0, %v441_v5, 0.0 }
  0x47   : > { %v498_v10 = vmax.f32 %v480_v9, 0.0 }
  0x4c   : > { %v862_v41 = vpop.eup %861 }
  0x4d   : > { %v864_v42 = vpop.eup %863 }
  0x4e   : > { %v866_v43 = vpop.eup %865  ;;  %v407_v44 = vadd.f32 %v864_v42, %v862_v41 }
  0x4f   : > { %v868_v45 = vpop.eup %867 }
  0x50   : > { %v408_v46 = vadd.f32 %v866_v43, %v407_v44 }
  0x52   : > { %v409_v47 = vadd.f32 %v868_v45, %v408_v46  ;;  %v554_v46 = vand.u32 127, %v472_v8 }
  0x54   : > { %869 = vlog2.f32 %v409_v47  ;;  %vm555_vm1 = vcmp.eq.s32.totalorder %v554_v46, 0  ;;  %vm558_vm2 = vcmp.eq.s32.totalorder %v554_v46, 1  ;;  %vm562_vm3 = vcmp.eq.s32.totalorder %v554_v46, 2 }
  0x55   : > { %vm566_vm4 = vcmp.eq.s32.totalorder %v554_v46, 3  ;;  %vm570_vm5 = vcmp.eq.s32.totalorder %v554_v46, 4 }
  0x5e   : > { %v870_v58 = vpop.eup %869 }
  0x5f   : > { %v411_v59 = vmul.f32 0.6931472, %v870_v58 }
  0x61   : > { %v412_v62 = vadd.f32 %v411_v59, %v394_v25 }
  0x63   : > { %v423_v2 = vmul.f32 %v415_v39, %v412_v62 }
  0x65   : > { %v424_v3 = vsub.f32 %v423_v2, %v422_v60 }
  0x67   : > { %v476_v6 = vsel %vm475_vm0, %v424_v3, 0.0 }
  0x68   : > { %504 = vadd.xlane.f32.xlu0 %v476_v6 }
  0x6c   : > { %514 = vadd.xlane.f32.xlu0 %v477_v7 }
  0x70   : > { %544 = vmax.xlane.f32.xlu0 %v498_v10 }
  0xcf   : > { %v525_v11 = vpop.xlane.xlu1 %524 }
  0xd0   : > { %v526_v13 = vrot.slane %v525_v11, 4 }
  0xd2   : > { %v527_v15 = vadd.f32 %v526_v13, %v525_v11 }
  0xd3   : > { %v535_v12 = vpop.xlane.xlu1 %534 }
  0xd4   : > { %v536_v14 = vrot.slane %v535_v12, 4  ;;  %v528_v21 = vrot.slane %v527_v15, 2 }
  0xd6   : > { %v537_v19 = vadd.f32 %v536_v14, %v535_v12  ;;  %v529_v28 = vadd.f32 %v528_v21, %v527_v15 }
  0xd8   : > { %v538_v24 = vrot.slane %v537_v19, 2  ;;  %v530_v36 = vrot.slane %v529_v28, 1 }
  0xda   : > { %v539_v29 = vadd.f32 %v538_v24, %v537_v19  ;;  %v531_v42 = vadd.f32 %v530_v36, %v529_v28 }
  0xdc   : > { %v540_v39 = vrot.slane %v539_v29, 1 }
  0xde   : > { %v541_v43 = vadd.f32 %v540_v39, %v539_v29 }
  0xf5   : > { %v505_v17 = vpop.xlane.xlu0 %504 }
  0xf6   : > { %v506_v18 = vrot.slane %v505_v17, 4 }
  0xf8   : > { %v507_v20 = vadd.f32 %v506_v18, %v505_v17 }
  0xf9   : > { %v515_v22 = vpop.xlane.xlu0 %514 }
  0xfa   : > { %v508_v23 = vrot.slane %v507_v20, 2  ;;  %v516_v25 = vrot.slane %v515_v22, 4 }
  0xfc   : > { %v517_v26 = vadd.f32 %v516_v25, %v515_v22  ;;  %v509_v16 = vadd.f32 %v508_v23, %v507_v20 }
  0xfd   : > { %v545_v27 = vpop.xlane.xlu0 %544 }
  0xfe   : > { %v518_v30 = vrot.slane %v517_v26, 2  ;;  %v546_v31 = vrot.slane %v545_v27, 4  ;;  %v510_v32 = vrot.slane %v509_v16, 1 }
 0x100   : > { %v547_v33 = vmax.f32 %v545_v27, %v546_v31  ;;  %v511_v34 = vadd.f32 %v510_v32, %v509_v16  ;;  %v519_v35 = vadd.f32 %v518_v30, %v517_v26 }
 0x102   : > { %v548_v37 = vrot.slane %v547_v33, 2  ;;  %747 = vpush %v511_v34  ;;  %v520_v38 = vrot.slane %v519_v35, 1 }
 0x104   : > { %v549_v40 = vmax.f32 %v547_v33, %v548_v37  ;;  %v521_v41 = vadd.f32 %v520_v38, %v519_v35 }
 0x106   : > { %749 = vpush %v521_v41  ;;  %v550_v44 = vrot.slane %v549_v40, 1 }
 0x107   : > { %751 = vpush %v531_v42 }
 0x108   : > { %753 = vpush %v541_v43  ;;  %v551_v45 = vmax.f32 %v549_v40, %v550_v44 }
 0x10a   : > { %755 = vpush %v551_v45 }
 0x133   : > { %s748_s9 = spop %747 }
 0x134   : > { %v556_v47 = vstv %s748_s9 }
 0x135   : > { %v557_v49 = vsel %vm555_vm1, %v556_v47, 0.0 }
 0x137   : > { %s750_s17 = spop %749 }
 0x138   : > { %v559_v48 = vstv %s750_s17  ;;  %s752_s19 = spop %751 }
 0x139   : > { %v560_v50 = vsel %vm558_vm2, %v559_v48, 0.0  ;;  %v563_v51 = vstv %s752_s19  ;;  %s754_s20 = spop %753 }
 0x13a   : > { %v561_v52 = vadd.f32 %v560_v50, %v557_v49  ;;  %v567_v53 = vstv %s754_s20  ;;  %v564_v54 = vsel %vm562_vm3, %v563_v51, 0.0 }
 0x13b   : > { %s756_s21 = spop %755  ;;  %v568_v56 = vsel %vm566_vm4, %v567_v53, 0.0 }
 0x13c   : > { %v565_v8 = vadd.f32 %v564_v54, %v561_v52  ;;  %v571_v55 = vstv %s756_s21 }
 0x13d   : > { %v572_v58 = vsel %vm570_vm5, %v571_v55, 0.0 }
 0x13e   : > { %v569_v57 = vadd.f32 %v568_v56, %v565_v8 }
 0x140   : > { %v573_v59 = vadd.f32 %v572_v58, %v569_v57 }
 0x142   : > { %574 = vst [vmem:[%s374_s25] sm:$0xff] %v573_v59 }
 0x143 PF: > { %s12_s13 = sadd.s32 1, %s941_s13   ;;  %s1079_s9 = smov %s929_s10 }
 0x144   : > { %p9_p12 = scmp.ge.s32.totalorder %s12_s13, 4   ;;  %s1080_s10 = smov %s1005_s18 }
 0x145   : > { %s1081_s11 = smov %s937_s12  ;;  %s1082_s12 = smov %s1084_s14 }
 0x146   :  { %11 = sbr.rel (!%p9_p12) target bundleno = 3 (0x3), region = 195 }

</bundles_post_ra>
